<compile_context>
chip_gen: v6e
topology: v6e:2x2x1
jax: 0.10.0
libtpu: 0.0.40
codegen_flags: <defaults>
</compile_context>

<pallas_src>
import functools

import jax
import jax.numpy as jnp
from jax.experimental import pallas as pl
from jax.experimental.pallas import tpu as pltpu

LANE = 128


def _round_up(x, m):
    return ((x + m - 1) // m) * m


def _has_bf16_eup():
    """bf16 transcendental path exists on v6e/v7x; not on v5e and older."""
    try:
        kind = jax.devices()[0].device_kind.lower()
    except Exception:
        return False
    for old in ("v2", "v3", "v4", "v5"):
        if old in kind:
            return False
    return True


def _policy_net_kernel(x_ref, w1_ref, b1_ref, w2_ref, b2_ref, out_ref, *, bf16_exp):
    # hidden = relu(x @ W1 + b1) -- bf16 operands, f32 accumulation on the MXU
    h = jnp.dot(x_ref[...], w1_ref[...], preferred_element_type=jnp.float32)
    h = jnp.maximum(h + b1_ref[...], 0.0)

    # logits = h @ W2 + b2 -- action axis padded to 128 lanes; padded columns
    # carry a -1e30 bias (added in f32, AFTER the f32-accumulated matmul) so
    # exp() underflows to exactly 0 below.
    logits = jnp.dot(h.astype(jnp.bfloat16), w2_ref[...],
                     preferred_element_type=jnp.float32) + b2_ref[...]

    # numerically stable softmax along dim=1
    m = jnp.max(logits, axis=1, keepdims=True)
    z = logits - m
    if bf16_exp:
        # v6e/v7x: bf16 EUP (~2x exp throughput); max/sum/divide stay f32.
        e = jnp.exp(z.astype(jnp.bfloat16)).astype(jnp.float32)
    else:
        e = jnp.exp(z)
    denom = jnp.sum(e, axis=1, keepdims=True)
    # exact divide (not approx reciprocal): rows sum to 1 for downstream sampling
    out_ref[...] = (e / denom).astype(out_ref.dtype)


def prepare_policy_params(w1, b1, w2, b2):
    """One-time parameter prep (do NOT call per forward pass).

    Pads the action axis to a multiple of 128 lanes (padded logit columns get a
    -1e30 bias so softmax is unchanged) and casts the MXU operands to bf16.
    """
    num_inputs, hidden = w1.shape
    num_actions = w2.shape[1]
    a_pad = _round_up(num_actions, LANE)

    w2_p = jnp.zeros((hidden, a_pad), jnp.float32).at[:, :num_actions].set(
        w2.astype(jnp.float32))
    b2_p = jnp.full((1, a_pad), -1e30, jnp.float32).at[:, :num_actions].set(
        jnp.reshape(b2, (1, num_actions)).astype(jnp.float32))

    return {
        "w1": w1.astype(jnp.bfloat16),                        # [num_inputs, hidden]
        "b1": jnp.reshape(b1, (1, hidden)).astype(jnp.float32),
        "w2": w2_p.astype(jnp.bfloat16),                      # [hidden, a_pad]
        "b2": b2_p,                                           # f32, carries pad bias
        "num_inputs": num_inputs,
        "hidden": hidden,
        "num_actions": num_actions,
        "a_pad": a_pad,
    }


def policy_network_forward(state, params, *, block_b=2048, out_dtype=jnp.float32,
                           bf16_exp=None, return_padded=False):
    """state: [B, num_inputs] f32; params from prepare_policy_params.

    Returns softmax probs [B, num_actions] (out_dtype), or the padded
    [B_padded, a_pad] slab if return_padded=True (padded columns are exactly 0).
    """
    B, num_inputs = state.shape
    w1, b1, w2, b2 = params["w1"], params["b1"], params["w2"], params["b2"]
    hidden = params["hidden"]
    a_pad = params["a_pad"]
    num_actions = params["num_actions"]
    assert num_inputs == params["num_inputs"]

    if bf16_exp is None:
        bf16_exp = _has_bf16_eup()

    x_bf = state.astype(jnp.bfloat16)

    # ---- batch tiling over a "parallel" grid axis ----------------------------
    if B > block_b:
        tb = block_b                              # multiple of 16
    elif B >= 32:
        # guarantee >= 2 grid steps so both v7x TensorCores get work
        tb = _round_up(pl.cdiv(B, 2), 16)
    else:
        tb = B                                    # tiny batch: single full block
    b_padded = pl.cdiv(B, tb) * tb
    if b_padded != B:
        x_bf = jnp.pad(x_bf, ((0, b_padded - B), (0, 0)))
    grid = (b_padded // tb,)

    kernel = functools.partial(_policy_net_kernel, bf16_exp=bf16_exp)

    out = pl.pallas_call(
        kernel,
        out_shape=jax.ShapeDtypeStruct((b_padded, a_pad), out_dtype),
        grid=grid,
        in_specs=[
            pl.BlockSpec((tb, num_inputs), lambda i: (i, 0)),      # state tile
            pl.BlockSpec((num_inputs, hidden), lambda i: (0, 0)),  # W1 (resident)
            pl.BlockSpec((1, hidden), lambda i: (0, 0)),           # b1 (resident)
            pl.BlockSpec((hidden, a_pad), lambda i: (0, 0)),       # W2 (resident)
            pl.BlockSpec((1, a_pad), lambda i: (0, 0)),            # b2 (resident)
        ],
        out_specs=pl.BlockSpec((tb, a_pad), lambda i: (i, 0)),
        compiler_params=pltpu.CompilerParams(
            dimension_semantics=("parallel",),        # megacore sharding on v7x
            vmem_limit_bytes=32 * 1024 * 1024,        # explicit cap; footprint ~ few MiB
        ),
    )(x_bf, w1, b1, w2, b2)

    if return_padded:
        return out            # padded action columns are exactly 0
    return out[:B, :num_actions]


def init_params(key, num_inputs, num_actions, hidden_size):
    """Deterministic init mimicking nn.Linear's uniform(-1/sqrt(fan_in), 1/sqrt(fan_in))."""
    k1, k2, k3, k4 = jax.random.split(key, 4)
    bound1 = 1.0 / jnp.sqrt(num_inputs)
    bound2 = 1.0 / jnp.sqrt(hidden_size)
    # stored as [in, out] (transposed vs PyTorch's [out, in])
    w1 = jax.random.uniform(k1, (num_inputs, hidden_size), jnp.float32, -bound1, bound1)
    b1 = jax.random.uniform(k2, (1, hidden_size), jnp.float32, -bound1, bound1)
    w2 = jax.random.uniform(k3, (hidden_size, num_actions), jnp.float32, -bound2, bound2)
    b2 = jax.random.uniform(k4, (1, num_actions), jnp.float32, -bound2, bound2)
    return w1, b1, w2, b2


if __name__ == "__main__":
    # TODO(synk): get_action's np.random.choice sampling, Adam optimizer state and
    # stored-prob bookkeeping are host-side logic outside the forward pass.
    num_inputs, num_actions, hidden_size = 4, 8, 32
    batch = 2

    key = jax.random.PRNGKey(0)
    k_params, k_state = jax.random.split(key)
    w1, b1, w2, b2 = init_params(k_params, num_inputs, num_actions, hidden_size)
    state = jax.random.normal(k_state, (batch, num_inputs), jnp.float32)

    # one-time prep (padding + bf16 casts happen here, not per call)
    params = prepare_policy_params(w1, b1, w2, b2)

    probs = policy_network_forward(state, params)
    probs = jax.block_until_ready(probs)

    # pure-JAX f32 reference of the same forward pass
    h_ref = jnp.maximum(state @ w1 + b1, 0.0)
    ref = jax.nn.softmax(h_ref @ w2 + b2, axis=1)

    assert probs.shape == (batch, num_actions)
    assert jnp.allclose(jnp.sum(probs, axis=1), 1.0, atol=1e-3)   # exact divide -> ~1
    assert jnp.allclose(probs, ref, atol=2e-2)                    # bf16-MXU tolerance

    # also exercise the bf16-output path (halves the dominant HBM write traffic)
    probs_bf16 = policy_network_forward(state, params, out_dtype=jnp.bfloat16)
    probs_bf16 = jax.block_until_ready(probs_bf16)
    assert probs_bf16.shape == (batch, num_actions)
    assert jnp.allclose(jnp.sum(probs_bf16.astype(jnp.float32), axis=1), 1.0, atol=3e-2)

    print("KERNEL_OK")
</pallas_src>

<mosaic_0001>
module attributes {stable_mosaic.version = 11 : i64} {
  func.func @_policy_net_kernel(%arg0: i32, %arg1: memref<2x4xbf16, #tpu.memory_space<vmem>>, %arg2: memref<4x32xbf16, #tpu.memory_space<vmem>>, %arg3: memref<1x32xf32, #tpu.memory_space<vmem>>, %arg4: memref<32x128xbf16, #tpu.memory_space<vmem>>, %arg5: memref<1x128xf32, #tpu.memory_space<vmem>>, %arg6: memref<2x128xf32, #tpu.memory_space<vmem>>) attributes {dimension_semantics = [#tpu.dimension_semantics<parallel>], iteration_bounds = array<i64: 1>, scalar_prefetch = 0 : i64, scratch_operands = 0 : i64, tpu.core_type = #tpu.core_type<tc>, window_params = [{transform_indices = @transform_0, window_bounds = array<i64: 2, 4>}, {pipeline_mode = #tpu.pipeline_mode<synchronous>, transform_indices = @transform_1, window_bounds = array<i64: 4, 32>}, {pipeline_mode = #tpu.pipeline_mode<synchronous>, transform_indices = @transform_2, window_bounds = array<i64: 1, 32>}, {pipeline_mode = #tpu.pipeline_mode<synchronous>, transform_indices = @transform_3, window_bounds = array<i64: 32, 128>}, {pipeline_mode = #tpu.pipeline_mode<synchronous>, transform_indices = @transform_4, window_bounds = array<i64: 1, 128>}, {transform_indices = @transform_5, window_bounds = array<i64: 2, 128>}]} {
    %c0 = arith.constant 0 : index
    %c0_0 = arith.constant 0 : index
    %0 = vector.load %arg1[%c0, %c0_0] : memref<2x4xbf16, #tpu.memory_space<vmem>>, vector<2x4xbf16>
    %c0_1 = arith.constant 0 : index
    %c0_2 = arith.constant 0 : index
    %1 = vector.load %arg2[%c0_1, %c0_2] : memref<4x32xbf16, #tpu.memory_space<vmem>>, vector<4x32xbf16>
    %cst = arith.constant dense<0.000000e+00> : vector<2x32xf32>
    %2 = tpu.matmul %0, %1, %cst {dimension_numbers = #tpu.dot_dimension_numbers<[1], [0], [0], [1], [0, 0, 1, 1], [], []>} : vector<2x4xbf16>, vector<4x32xbf16>, vector<2x32xf32> -> vector<2x32xf32>
    %c0_3 = arith.constant 0 : index
    %c0_4 = arith.constant 0 : index
    %3 = vector.load %arg3[%c0_3, %c0_4] : memref<1x32xf32, #tpu.memory_space<vmem>>, vector<1x32xf32>
    %4 = vector.broadcast %3 : vector<1x32xf32> to vector<2x32xf32>
    %5 = arith.addf %2, %4 : vector<2x32xf32>
    %cst_5 = arith.constant 0.000000e+00 : f32
    %6 = vector.broadcast %cst_5 : f32 to vector<2x32xf32>
    %7 = arith.maximumf %5, %6 : vector<2x32xf32>
    %8 = arith.truncf %7 : vector<2x32xf32> to vector<2x32xbf16>
    %c0_6 = arith.constant 0 : index
    %c0_7 = arith.constant 0 : index
    %9 = vector.load %arg4[%c0_6, %c0_7] : memref<32x128xbf16, #tpu.memory_space<vmem>>, vector<32x128xbf16>
    %cst_8 = arith.constant dense<0.000000e+00> : vector<2x128xf32>
    %10 = tpu.matmul %8, %9, %cst_8 {dimension_numbers = #tpu.dot_dimension_numbers<[1], [0], [0], [1], [0, 0, 1, 1], [], []>} : vector<2x32xbf16>, vector<32x128xbf16>, vector<2x128xf32> -> vector<2x128xf32>
    %c0_9 = arith.constant 0 : index
    %c0_10 = arith.constant 0 : index
    %11 = vector.load %arg5[%c0_9, %c0_10] : memref<1x128xf32, #tpu.memory_space<vmem>>, vector<1x128xf32>
    %12 = vector.broadcast %11 : vector<1x128xf32> to vector<2x128xf32>
    %13 = arith.addf %10, %12 : vector<2x128xf32>
    %cst_11 = arith.constant dense<0xFF800000> : vector<2xf32>
    %14 = vector.multi_reduction <maximumf>, %13, %cst_11 [1] : vector<2x128xf32> to vector<2xf32>
    %15 = vector.shape_cast %14 : vector<2xf32> to vector<2x1xf32>
    %16 = vector.broadcast %15 : vector<2x1xf32> to vector<2x128xf32>
    %17 = arith.subf %13, %16 : vector<2x128xf32>
    %18 = arith.truncf %17 : vector<2x128xf32> to vector<2x128xbf16>
    %19 = math.exp %18 : vector<2x128xbf16>
    %20 = arith.extf %19 : vector<2x128xbf16> to vector<2x128xf32>
    %cst_12 = arith.constant dense<0.000000e+00> : vector<2xf32>
    %21 = vector.multi_reduction <add>, %20, %cst_12 [1] : vector<2x128xf32> to vector<2xf32>
    %22 = vector.shape_cast %21 : vector<2xf32> to vector<2x1xf32>
    %23 = vector.broadcast %22 : vector<2x1xf32> to vector<2x128xf32>
    %24 = arith.divf %20, %23 : vector<2x128xf32>
    %c0_13 = arith.constant 0 : index
    %c0_14 = arith.constant 0 : index
    %25 = vector.load %arg6[%c0_13, %c0_14] : memref<2x128xf32, #tpu.memory_space<vmem>>, vector<2x128xf32>
    tpu.vector_store %arg6[%c0_13, %c0_14], %24 {strides = array<i32>} : memref<2x128xf32, #tpu.memory_space<vmem>>, vector<2x128xf32>,
    return
  }
  func.func @transform_0(%arg0: i32) -> (i32, i32) {
    %c0_i32 = arith.constant 0 : i32
    %c0_i32_0 = arith.constant 0 : i32
    return %arg0, %c0_i32 : i32, i32
  }
  func.func @transform_1(%arg0: i32) -> (i32, i32) {
    %c0_i32 = arith.constant 0 : i32
    %c0_i32_0 = arith.constant 0 : i32
    %c0_i32_1 = arith.constant 0 : i32
    return %c0_i32, %c0_i32_0 : i32, i32
  }
  func.func @transform_2(%arg0: i32) -> (i32, i32) {
    %c0_i32 = arith.constant 0 : i32
    %c0_i32_0 = arith.constant 0 : i32
    %c0_i32_1 = arith.constant 0 : i32
    return %c0_i32, %c0_i32_0 : i32, i32
  }
  func.func @transform_3(%arg0: i32) -> (i32, i32) {
    %c0_i32 = arith.constant 0 : i32
    %c0_i32_0 = arith.constant 0 : i32
    %c0_i32_1 = arith.constant 0 : i32
    return %c0_i32, %c0_i32_0 : i32, i32
  }
  func.func @transform_4(%arg0: i32) -> (i32, i32) {
    %c0_i32 = arith.constant 0 : i32
    %c0_i32_0 = arith.constant 0 : i32
    %c0_i32_1 = arith.constant 0 : i32
    return %c0_i32, %c0_i32_0 : i32, i32
  }
  func.func @transform_5(%arg0: i32) -> (i32, i32) {
    %c0_i32 = arith.constant 0 : i32
    %c0_i32_0 = arith.constant 0 : i32
    return %arg0, %c0_i32 : i32, i32
  }
}

</mosaic_0001>

<bundles_post_ra>
// kernel: tpu_custom_call.1
= control target key start
LH: loop header
LB: loop body
LE: loop exit
PB: predicated region body
PF: predicated region fallthrough
CT: control target
= control target key end

     0   :  { %10 = vsyncpa [#allocation3], 0  ;;  %s400_s0 = inlined_call_operand.hbm [shape: bf16[2,4], index: 0, kind: input, shape index: {}]   ;;  %s401_s1 = inlined_call_operand.hbm [shape: bf16[4,32], index: 1, kind: input, shape index: {}]   ;;  %s402_s2 = inlined_call_operand.vmem [shape: f32[1,32], index: 2, kind: input, shape index: {}]   ;;  %s403_s3 = inlined_call_operand.hbm [shape: bf16[32,128], index: 3, kind: input, shape index: {}]   ;;  %s404_s4 = inlined_call_operand.vmem [shape: f32[1,128], index: 4, kind: input, shape index: {}]   ;;  %s405_s5 = inlined_call_operand.hbm [shape: f32[2,128], index: 5, kind: output, shape index: {}]  }
   0x1   :  { %11 = vsyncpa [#allocation6], 0 }
   0x2   :  { %12 = vsyncpa [#allocation4], 0  ;;  %s341_s18 = smov [#allocation5]   ;;  %s342_s20 = smov [#allocation2]  }
   0x3   :  { %s29_s19 = sshll.u32 %s341_s18, 4  ;;  %s19_s21 = sshll.u32 %s342_s20, 4  ;;  %s30_s19 = int_to_ptr.vmem [resolvable:$true] %s29_s19  ;;  %s20_s21 = int_to_ptr.vmem [resolvable:$true] %s19_s21 }
   0x4   :  { %s263_s22 = scalar_lea.vmem %s30_s19, 32  ;;  %p268_p1 = scmp.lt.s32.totalorder %s30_s19, %s30_s19 }
   0x5   :  { %p264_p0 = scmp.ne.s32.totalorder %s30_s19, %s263_s22  ;;  %p269_p2 = scmp.lt.s32.totalorder %s263_s22, %s263_s22 }
   0x7   :  { %p270_p3 = por %p269_p2, %p268_p1 }
   0x9   :  { %p271_p4 = pnand %p270_p3, %p264_p0 }
   0xb   :  { %274 = shalt.err (!%p271_p4)
}
   0xc   :  { %32 = dma.hbm_to_vmem [thread:$0]  %s401_s1, 32, %s30_s19, [#allocation6]  }
   0xd   :  { %s283_s25 = scalar_lea.vmem %s20_s21, 16  ;;  %s287_s26 = scalar_lea.vmem %s20_s21, 32 }
   0xe   :  { %p284_p5 = scmp.ne.s32.totalorder %s20_s21, %s283_s25  ;;  %p288_p6 = scmp.lt.s32.totalorder %s20_s21, %s20_s21 }
   0xf   :  { %p289_p7 = scmp.lt.s32.totalorder %s287_s26, %s283_s25 }
  0x11   :  { %p290_p8 = por %p289_p7, %p288_p6 }
  0x13   :  { %p291_p9 = pnand %p290_p8, %p284_p5 }
  0x15   :  { %294 = shalt.err (!%p291_p9)
}
  0x16   :  { %22 = dma.hbm_to_vmem [thread:$0]  %s400_s0, 16, %s20_s21, [#allocation3]  }
  0x17   :  { %s343_s29 = smov [#allocation7]  }
  0x18   :  { %s40_s30 = sshll.u32 %s343_s29, 4  ;;  %s41_s30 = int_to_ptr.vmem [resolvable:$true] %s40_s30 }
  0x19   :  { %s303_s6 = scalar_lea.vmem %s41_s30, 256  ;;  %p308_p11 = scmp.lt.s32.totalorder %s41_s30, %s41_s30 }
  0x1a   :  { %p304_p10 = scmp.ne.s32.totalorder %s41_s30, %s303_s6  ;;  %p309_p12 = scmp.lt.s32.totalorder %s303_s6, %s303_s6 }
  0x1c   :  { %p310_p13 = por %p309_p12, %p308_p11 }
  0x1e   :  { %p311_p0 = pnand %p310_p13, %p304_p10 }
  0x20   :  { %314 = shalt.err (!%p311_p0)
}
  0x21   :  { %s344_s1 = smov 64   ;;  %s345_s7 = smov 4  }
  0x22   :  { %46 = dma.hbm_to_vmem [thread:$0]  %s403_s3, 256, %s41_s30, [#allocation6], %s344_s1, %s344_s1, %s345_s7  }
  0x23   :  { %335 = dma.done.wait [#allocation3], 16  }
  0x24   :  { %336 = vsyncadd [#allocation3], 4294967280 }
  0x25   :  { %337 = dma.done.wait [#allocation6], 288  }
  0x26   :  { %338 = vsyncadd [#allocation6], 4294967008  ;;  %v346_v0 = vmov 0.0   ;;  %vm347_vm0 = vmmov 0   ;;  %vm72_vm1 = vcmask 1041408   ;;  %vm68_vm2 = vcmask 31744  }
  0x27   :  { %227 = vmatprep.subr.bf16.mxu0 %v346_v0  ;;  %229 = vmatprep.mubr.msk.bf16.mxu0 %vm347_vm0, %v346_v0  ;;  %v60_v1 = vld [vmem:[#allocation5] sm:$0x3]  ;;  %v59_v3 = vld [vmem:[#allocation2] sm:$0x1]  ;;  %v249_v4 = vld [vmem:[#allocation7 + $0x8] sm:$0xff]   ;;  %vm141_vm3 = vcmask 261120  }
  0x28   :  { %233 = vmatprep.subr.bf16.mxu1 %v346_v0  ;;  %237 = vmatprep.mubr.msk.bf16.mxu1 %vm347_vm0, %v346_v0  ;;  %v74_v2 = vsel %vm72_vm1, %v60_v1, 0  ;;  %v250_v5 = vld [vmem:[#allocation7] sm:$0xff]   ;;  %v216_v6 = vld [vmem:[%s402_s2] ss:$0 sm:$0xff]  ;;  %s348_s2 = smov [#allocation8]  }
  0x29   :  { %228 = vmatpush3.bf16.msra.mxu0 %v74_v2  ;;  %234 = vmatpush3.bf16.msra.mxu1 %v249_v4  ;;  %v218_v14 = vld [vmem:[%s404_s4] ss:$0 sm:$0xff]  ;;  %s206_s4 = sshll.u32 %s348_s2, 4  ;;  %s207_s4 = int_to_ptr.vmem [resolvable:$true] %s206_s4 }
  0x2a   :  { %235 = vmatprep.subr.bf16.mxu1 %v346_v0  ;;  %s315_s12 = scalar_lea.vmem %s207_s4, 32  ;;  %p320_p2 = scmp.lt.s32.totalorder %s207_s4, %s207_s4 }
  0x2b   :  { %p316_p1 = scmp.ne.s32.totalorder %s207_s4, %s315_s12  ;;  %p321_p3 = scmp.lt.s32.totalorder %s315_s12, %s315_s12 }
  0x2c   :  { %230 = vmatmul.mubr.msk.bf16.vlgmr.msra.gmra.mxu0 %vm68_vm2, %v59_v3 }
  0x2d   :  { %236 = vmatpush3.bf16.msra.mxu1 %v250_v5  ;;  %p322_p4 = por %p321_p3, %p320_p2 }
  0x2f   :  { %p323_p5 = pnand %p322_p4, %p316_p1 }
  0xec   :  { %v110_v7 = vpop.f32.mrf.mxu0 }
  0xed   :  { %v111_v8 = vadd.f32 %v216_v6, %v110_v7 }
  0xee   :  { %v231_v9 = vpop.f32.mrf.mxu0 }
  0xef   :  { %v116_v10 = vmax.f32 %v111_v8, 0.0 }
  0xf0   :  { %v113_v11 = vpop.f32.mrf.mxu0 }
  0xf1   :  { %v117_v12 = vpack.c.bf16 %v116_v10, %v116_v10 }
  0xf2   :  { %v232_v13 = vpop.f32.mrf.mxu0 }
  0xf3   :  { %238 = vmatmul.mubr.msk.bf16.vlgmr.msra.gmra.mxu1 %vm141_vm3, %v117_v12 }
 0x1b3   :  { %v179_v15 = vpop.f32.mrf.mxu1 }
 0x1b4   :  { %v180_v16 = vadd.f32 %v218_v14, %v179_v15 }
 0x1b5   :  { %v239_v17 = vpop.f32.mrf.mxu1 }
 0x1b6   :  { %v185_v18 = vsel %vm72_vm1, %v180_v16, -inf }
 0x1b7   :  { %186 = vmax.xlane.f32.xlu0 %v185_v18  ;;  %v182_v19 = vpop.f32.mrf.mxu1 }
 0x1b9   :  { %v240_v20 = vpop.f32.mrf.mxu1 }
 0x240   :  { %v187_v21 = vpop.xlane.xlu0 %186 }
 0x241   :  { %v188_v22 = vsub.f32 %v180_v16, %v187_v21 }
 0x243   :  { %v189_v23 = vpack.c.bf16 %v188_v22, %v188_v22 }
 0x245   :  { %v191_v24 = vmul.bf16 1069105081, %v189_v23 }
 0x247   :  { %251 = vpow.bf16 %v191_v24 }
 0x255   :  { %v252_v25 = vpop.eup %251 }
 0x256   :  { %v193_v26 = vunpack.c.l.bf16 %v252_v25 }
 0x258   :  { %v194_v27 = vsel %vm72_vm1, %v193_v26, 0.0 }
 0x259   :  { %195 = vadd.xlane.f32.xlu0 %v194_v27 }
 0x2e2   :  { %v196_v28 = vpop.xlane.xlu0 %195 }
 0x2e3   :  { %253 = vrcp.f32 %v196_v28 }
 0x2f0   :  { %v254_v29 = vpop.eup %253 }
 0x2f1   :  { %v198_v30 = vmul.f32 %v254_v29, %v193_v26 }
 0x2f3   :  { %199 = vst [vmem:[#allocation8] sm:$0x3] %v198_v30 }
 0x2f4   :  { %326 = shalt.err (!%p323_p5)
}
 0x2f5   :  { %209 = dma.vmem_to_hbm [thread:$0]  %s207_s4, 32, %s405_s5, [#allocation4]  }
 0x2f6   :  { %339 = dma.done.wait [#allocation4], 32  }
 0x2f7   :  { %340 = vsyncadd [#allocation4], 4294967264 }
 0x2f8   :  { %213 = vsyncpa [#allocation3], 1 }
 0x2f9   :  { %214 = vsyncpa [#allocation6], 1 }
 0x2fa   :  { %215 = vsyncpa [#allocation4], 1 }

</bundles_post_ra>
